<compile_context>
chip_gen: v7x
topology: tpu7x:2x2x1
jax: 0.10.0
libtpu: 0.0.40
codegen_flags: <defaults>
</compile_context>

<pallas_src>
import jax
import jax.numpy as jnp
from jax.experimental import pallas as pl
from jax.experimental.pallas import tpu as pltpu

# ---- small shapes consistent with input_size=(3, H, W) ---------------------
N, C_IN, H, W = 2, 3, 16, 16
KH = KW = 3
C_OUT = 32
NUM_CLASSES = 10
HW = H * W
K_RAW = KH * KW * C_IN     # 27
K_PAD = 32                 # zero-pad K to a sublane-friendly multiple of 8


# ---------------------------- Pallas kernel ----------------------------------
def fused_forward_kernel(p_ref, w_ref, b_ref, wh_ref, bh_ref, o_ref):
    """Fused per-image forward: im2col-conv matmul + bias + ReLU
    -> global-average-pool as an MXU contraction -> linear head.

    p_ref : (1, HW, K_PAD)        bf16 im2col patches for one image
    w_ref : (K_PAD, C_OUT)        bf16 conv weight (zero-padded K rows)
    b_ref : (1, C_OUT)            f32 conv bias
    wh_ref: (C_OUT, NUM_CLASSES)  f32 head weight with 1/(H*W) folded in
    bh_ref: (1, NUM_CLASSES)      f32 head bias
    o_ref : (1, 1, NUM_CLASSES)   f32 logits
    """
    p = p_ref[0]                                                        # (HW, K_PAD)
    acc = jnp.dot(p, w_ref[...], preferred_element_type=jnp.float32)    # MXU
    y = jnp.maximum(acc + b_ref[...], 0.0)                              # VPU, stays in VMEM
    # Pool as an MXU contraction instead of an XLU sublane reduction; the
    # 1/(H*W) mean scale is folded into wh_ref in the wrapper.
    ones_row = jnp.ones((1, HW), jnp.float32)
    pooled = jnp.dot(ones_row, y, preferred_element_type=jnp.float32)   # (1, C_OUT)
    logits = jnp.dot(pooled, wh_ref[...],
                     preferred_element_type=jnp.float32) + bh_ref[...]  # (1, NUM_CLASSES)
    o_ref[0] = logits


# ------------------------------ wrappers --------------------------------------
def fused_forward(patches_bf16, w_mat_bf16, conv_b_row, wh_scaled, head_b_row):
    flops = (2 * N * HW * K_PAD * C_OUT          # conv matmul
             + 2 * N * HW * C_OUT                # pool contraction
             + 2 * N * C_OUT * NUM_CLASSES)      # head matmul
    bytes_accessed = (patches_bf16.size * 2 + w_mat_bf16.size * 2
                      + conv_b_row.size * 4 + wh_scaled.size * 4
                      + head_b_row.size * 4 + N * NUM_CLASSES * 4)
    out3 = pl.pallas_call(
        fused_forward_kernel,
        out_shape=jax.ShapeDtypeStruct((N, 1, NUM_CLASSES), jnp.float32),
        grid=(N,),
        in_specs=[
            pl.BlockSpec((1, HW, K_PAD), lambda i: (i, 0, 0)),
            pl.BlockSpec((K_PAD, C_OUT), lambda i: (0, 0)),
            pl.BlockSpec((1, C_OUT), lambda i: (0, 0)),
            pl.BlockSpec((C_OUT, NUM_CLASSES), lambda i: (0, 0)),
            pl.BlockSpec((1, NUM_CLASSES), lambda i: (0, 0)),
        ],
        out_specs=pl.BlockSpec((1, 1, NUM_CLASSES), lambda i: (i, 0, 0)),
        compiler_params=pltpu.CompilerParams(
            dimension_semantics=("parallel",),      # shards batch across TCs (v7x)
            vmem_limit_bytes=32 * 1024 * 1024,      # safe on v7x's 64 MiB VMEM
        ),
        cost_estimate=pl.CostEstimate(
            flops=flops, transcendentals=0, bytes_accessed=bytes_accessed),
    )(patches_bf16, w_mat_bf16, conv_b_row, wh_scaled, head_b_row)
    return out3.reshape(N, NUM_CLASSES)


def im2col_patches(x_nchw):
    """NCHW -> (N, H*W, K_PAD) im2col patches (3x3, stride 1, pad 1);
    column order (kh, kw, cin); zero-padded from K_RAW=27 to K_PAD=32."""
    x_nhwc = jnp.transpose(x_nchw, (0, 2, 3, 1))
    xp = jnp.pad(x_nhwc, ((0, 0), (1, 1), (1, 1), (0, 0)))
    cols = []
    for kh in range(KH):
        for kw in range(KW):
            cols.append(xp[:, kh:kh + H, kw:kw + W, :])
    patches = jnp.concatenate(cols, axis=-1).reshape(N, HW, K_RAW)
    return jnp.pad(patches, ((0, 0), (0, 0), (0, K_PAD - K_RAW)))


def prep_params(conv_w, conv_b, head_w, head_b):
    # conv_w is PyTorch OIHW -> (kh, kw, cin, cout) -> 2D matmul weight, K padded.
    w_mat = jnp.transpose(conv_w, (2, 3, 1, 0)).reshape(K_RAW, C_OUT)
    w_mat = jnp.pad(w_mat, ((0, K_PAD - K_RAW), (0, 0))).astype(jnp.bfloat16)
    conv_b_row = conv_b.reshape(1, C_OUT).astype(jnp.float32)
    # Fold the 1/(H*W) mean into the head weight so the kernel pool is a plain sum.
    wh_scaled = (head_w.T * (1.0 / float(HW))).astype(jnp.float32)
    head_b_row = head_b.reshape(1, NUM_CLASSES).astype(jnp.float32)
    return w_mat, conv_b_row, wh_scaled, head_b_row


def forward(x_nchw, conv_w, conv_b, head_w, head_b):
    """x_nchw: (N, Cin, H, W) PyTorch layout; returns (N, num_classes)."""
    patches = im2col_patches(x_nchw).astype(jnp.bfloat16)
    w_mat, conv_b_row, wh_scaled, head_b_row = prep_params(conv_w, conv_b, head_w, head_b)
    return fused_forward(patches, w_mat, conv_b_row, wh_scaled, head_b_row)


def forward_reference(x_nchw, conv_w, conv_b, head_w, head_b):
    """Pure-JAX reference (same math / same bf16 operand quantization, no Pallas)."""
    patches = im2col_patches(x_nchw).astype(jnp.bfloat16)
    w_mat, conv_b_row, wh_scaled, head_b_row = prep_params(conv_w, conv_b, head_w, head_b)
    y = jnp.maximum(
        jnp.matmul(patches, w_mat, preferred_element_type=jnp.float32) + conv_b_row,
        0.0)                                            # (N, HW, C_OUT)
    pooled = jnp.sum(y, axis=1)                         # (N, C_OUT) sum (mean folded into wh)
    return jnp.matmul(pooled, wh_scaled,
                      preferred_element_type=jnp.float32) + head_b_row


if __name__ == "__main__":
    key = jax.random.PRNGKey(0)
    k1, k2, k3, k4, k5 = jax.random.split(key, 5)
    conv_w = jax.random.normal(k1, (C_OUT, C_IN, KH, KW), jnp.float32) * 0.1  # OIHW
    conv_b = jax.random.normal(k2, (C_OUT,), jnp.float32) * 0.1
    head_w = jax.random.normal(k3, (NUM_CLASSES, C_OUT), jnp.float32) * 0.1   # (out, in)
    head_b = jax.random.normal(k4, (NUM_CLASSES,), jnp.float32) * 0.1
    x = jax.random.normal(k5, (N, C_IN, H, W), jnp.float32)                   # NCHW

    out = jax.block_until_ready(forward(x, conv_w, conv_b, head_w, head_b))
    ref = jax.block_until_ready(forward_reference(x, conv_w, conv_b, head_w, head_b))

    assert out.shape == (N, NUM_CLASSES)
    # Tolerance reflects bf16 MXU operands (same quantization applied to the reference).
    assert jnp.allclose(out, ref, rtol=2e-2, atol=2e-2), (
        f"max abs diff {jnp.max(jnp.abs(out - ref))}")

    print("KERNEL_OK")
</pallas_src>

<mosaic_0001>
module attributes {stable_mosaic.version = 11 : i64} {
  func.func @fused_forward_kernel(%arg0: i32, %arg1: memref<1x256x32xbf16, #tpu.memory_space<vmem>>, %arg2: memref<32x32xbf16, #tpu.memory_space<vmem>>, %arg3: memref<1x32xf32, #tpu.memory_space<vmem>>, %arg4: memref<32x10xf32, #tpu.memory_space<vmem>>, %arg5: memref<1x10xf32, #tpu.memory_space<vmem>>, %arg6: memref<1x1x10xf32, #tpu.memory_space<vmem>>) attributes {dimension_semantics = [#tpu.dimension_semantics<parallel>], iteration_bounds = array<i64: 2>, scalar_prefetch = 0 : i64, scratch_operands = 0 : i64, tpu.core_type = #tpu.core_type<tc>, window_params = [{transform_indices = @transform_0, window_bounds = array<i64: 1, 256, 32>}, {pipeline_mode = #tpu.pipeline_mode<synchronous>, transform_indices = @transform_1, window_bounds = array<i64: 32, 32>}, {pipeline_mode = #tpu.pipeline_mode<synchronous>, transform_indices = @transform_2, window_bounds = array<i64: 1, 32>}, {pipeline_mode = #tpu.pipeline_mode<synchronous>, transform_indices = @transform_3, window_bounds = array<i64: 32, 10>}, {pipeline_mode = #tpu.pipeline_mode<synchronous>, transform_indices = @transform_4, window_bounds = array<i64: 1, 10>}, {transform_indices = @transform_5, window_bounds = array<i64: 1, 1, 10>}]} {
    %c0 = arith.constant 0 : index
    %c0_0 = arith.constant 0 : index
    %c0_1 = arith.constant 0 : index
    %0 = vector.load %arg1[%c0, %c0_0, %c0_1] : memref<1x256x32xbf16, #tpu.memory_space<vmem>>, vector<1x256x32xbf16>
    %1 = vector.shape_cast %0 : vector<1x256x32xbf16> to vector<256x32xbf16>
    %c0_2 = arith.constant 0 : index
    %c0_3 = arith.constant 0 : index
    %2 = vector.load %arg2[%c0_2, %c0_3] : memref<32x32xbf16, #tpu.memory_space<vmem>>, vector<32x32xbf16>
    %cst = arith.constant dense<0.000000e+00> : vector<256x32xf32>
    %3 = tpu.matmul %1, %2, %cst {dimension_numbers = #tpu.dot_dimension_numbers<[1], [0], [0], [1], [0, 0, 1, 1], [], []>} : vector<256x32xbf16>, vector<32x32xbf16>, vector<256x32xf32> -> vector<256x32xf32>
    %c0_4 = arith.constant 0 : index
    %c0_5 = arith.constant 0 : index
    %4 = vector.load %arg3[%c0_4, %c0_5] : memref<1x32xf32, #tpu.memory_space<vmem>>, vector<1x32xf32>
    %5 = vector.broadcast %4 : vector<1x32xf32> to vector<256x32xf32>
    %6 = arith.addf %3, %5 : vector<256x32xf32>
    %cst_6 = arith.constant 0.000000e+00 : f32
    %7 = vector.broadcast %cst_6 : f32 to vector<256x32xf32>
    %8 = arith.maximumf %6, %7 : vector<256x32xf32>
    %cst_7 = arith.constant 1.000000e+00 : f32
    %9 = vector.broadcast %cst_7 : f32 to vector<1x256xf32>
    %cst_8 = arith.constant dense<0.000000e+00> : vector<1x32xf32>
    %10 = tpu.matmul %9, %8, %cst_8 {dimension_numbers = #tpu.dot_dimension_numbers<[1], [0], [0], [1], [0, 0, 1, 1], [], []>} : vector<1x256xf32>, vector<256x32xf32>, vector<1x32xf32> -> vector<1x32xf32>
    %c0_9 = arith.constant 0 : index
    %c0_10 = arith.constant 0 : index
    %11 = vector.load %arg4[%c0_9, %c0_10] : memref<32x10xf32, #tpu.memory_space<vmem>>, vector<32x10xf32>
    %cst_11 = arith.constant dense<0.000000e+00> : vector<1x10xf32>
    %12 = tpu.matmul %10, %11, %cst_11 {dimension_numbers = #tpu.dot_dimension_numbers<[1], [0], [0], [1], [0, 0, 1, 1], [], []>} : vector<1x32xf32>, vector<32x10xf32>, vector<1x10xf32> -> vector<1x10xf32>
    %c0_12 = arith.constant 0 : index
    %c0_13 = arith.constant 0 : index
    %13 = vector.load %arg5[%c0_12, %c0_13] : memref<1x10xf32, #tpu.memory_space<vmem>>, vector<1x10xf32>
    %14 = arith.addf %12, %13 : vector<1x10xf32>
    %c0_14 = arith.constant 0 : index
    %c0_15 = arith.constant 0 : index
    %c0_16 = arith.constant 0 : index
    %15 = vector.load %arg6[%c0_14, %c0_15, %c0_16] : memref<1x1x10xf32, #tpu.memory_space<vmem>>, vector<1x1x10xf32>
    %16 = vector.shape_cast %15 : vector<1x1x10xf32> to vector<1x10xf32>
    %17 = vector.shape_cast %14 : vector<1x10xf32> to vector<1x1x10xf32>
    tpu.vector_store %arg6[%c0_14, %c0_15, %c0_16], %17 {strides = array<i32>} : memref<1x1x10xf32, #tpu.memory_space<vmem>>, vector<1x1x10xf32>,
    return
  }
  func.func @transform_0(%arg0: i32) -> (i32, i32, i32) {
    %c0_i32 = arith.constant 0 : i32
    %c0_i32_0 = arith.constant 0 : i32
    %c0_i32_1 = arith.constant 0 : i32
    return %arg0, %c0_i32, %c0_i32_0 : i32, i32, i32
  }
  func.func @transform_1(%arg0: i32) -> (i32, i32) {
    %c0_i32 = arith.constant 0 : i32
    %c0_i32_0 = arith.constant 0 : i32
    %c0_i32_1 = arith.constant 0 : i32
    return %c0_i32, %c0_i32_0 : i32, i32
  }
  func.func @transform_2(%arg0: i32) -> (i32, i32) {
    %c0_i32 = arith.constant 0 : i32
    %c0_i32_0 = arith.constant 0 : i32
    %c0_i32_1 = arith.constant 0 : i32
    return %c0_i32, %c0_i32_0 : i32, i32
  }
  func.func @transform_3(%arg0: i32) -> (i32, i32) {
    %c0_i32 = arith.constant 0 : i32
    %c0_i32_0 = arith.constant 0 : i32
    %c0_i32_1 = arith.constant 0 : i32
    return %c0_i32, %c0_i32_0 : i32, i32
  }
  func.func @transform_4(%arg0: i32) -> (i32, i32) {
    %c0_i32 = arith.constant 0 : i32
    %c0_i32_0 = arith.constant 0 : i32
    %c0_i32_1 = arith.constant 0 : i32
    return %c0_i32, %c0_i32_0 : i32, i32
  }
  func.func @transform_5(%arg0: i32) -> (i32, i32, i32) {
    %c0_i32 = arith.constant 0 : i32
    %c0_i32_0 = arith.constant 0 : i32
    %c0_i32_1 = arith.constant 0 : i32
    return %arg0, %c0_i32, %c0_i32_0 : i32, i32, i32
  }
}

</mosaic_0001>

<bundles_post_ra>
// kernel: tpu_custom_call.1
= control target key start
LH: loop header
LB: loop body
LE: loop exit
PB: predicated region body
PF: predicated region fallthrough
CT: control target
= control target key end

     0   :  { %10 = vsyncpa [#allocation3], 0  ;;  %s1386_s0 = inlined_call_operand.vmem [shape: bf16[2,256,32], index: 0, kind: input, shape index: {}]   ;;  %s1387_s1 = inlined_call_operand.vmem [shape: bf16[32,32], index: 1, kind: input, shape index: {}]   ;;  %s1388_s2 = inlined_call_operand.vmem [shape: f32[1,32], index: 2, kind: input, shape index: {}]   ;;  %s1389_s3 = inlined_call_operand.vmem [shape: f32[32,10], index: 3, kind: input, shape index: {}]   ;;  %s1390_s4 = inlined_call_operand.vmem [shape: f32[1,10], index: 4, kind: input, shape index: {}]   ;;  %s1391_s5 = inlined_call_operand.hbm [shape: f32[2,1,10], index: 5, kind: output, shape index: {}]  }
   0x1   :  { %12 = vsyncpa [#allocation3 + $0x1], 0  ;;  %s1167_s18 = smov 0   ;;  %s1169_s19 = smov 0  }
   0x2   :  { %s1171_s20 = smov 0   ;;  %s1173_s21 = smov 0  }
   0x3 LB: > { %s1188_s22 = sadd.s32 4294967295, %s1130_s21   ;;  %s818_s23 = sadd.s32 4294967294, %s1130_s21   ;;  %s1130_s21 = sphi %s1173_s21, %s1397_s21   ;;  %s1126_s20 = sphi %s1171_s20, %s1396_s20   ;;  %s1122_s19 = sphi %s1169_s19, %s1395_s19   ;;  %s1118_s18 = sphi %s1167_s18, %s1394_s18  }
   0x4   : > { %s1192_s24 = sadd.s32 1, %s1130_s21   ;;  %s135_s25 = sadd.s32 1, %s1126_s20 }
   0x5   : > { %s132_s26 = ssub.s32 %s1130_s21, %s1192_s24  ;;  %p145_p0 = scmp.ne.s32.totalorder %s1126_s20, %s1122_s19 }
   0x6   : > { %p133_p1 = scmp.eq.s32.totalorder %s132_s26, 0  ;;  %p146_p2 = scmp.eq.s32.totalorder %s1188_s22, 1 }
   0x7   : > { %p151_p3 = scmp.ne.s32.totalorder %s1122_s19, %s1118_s18  ;;  %p152_p4 = scmp.eq.s32.totalorder %s818_s23, 1 }
   0x8   : > { %s1203_s27 = scalar_select %p133_p1, %s1126_s20, %s135_s25  }
   0x9   : > { %p1205_p5 = por %p146_p2, %p145_p0  ;;  %p1209_p6 = por %p152_p4, %p151_p3 }
   0xa   : > { %p821_p7 = scmp.ge.s32.totalorder %s1130_s21, 1  ;;  %p190_p8 = scmp.lt.s32.totalorder %s1130_s21, 3 }
   0xc   : > { %p191_p9 = pnand %p821_p7, %p190_p8 }
   0xd   : > { %v1050_v0 = vld [vmem:[%s1387_s1] sm:$0xff] (!%p191_p9)   ;;  %p217_p10 = scmp.lt.s32.totalorder (!%p191_p9), %s1188_s22, 1  ;;  %v1051_v1 = vld [vmem:[%s1387_s1 + $0x8] sm:$0xff] (!%p191_p9)   ;;  %vm358_vm0 = vcmask (!%p191_p9), 261120   ;;  %v1132_v18 = vmov (!%p191_p9), 1.0   ;;  %vm1134_vm1 = vmmov (!%p191_p9), 0  }
   0xe   : > { %194 = sbr.rel (%p191_p9) target bundleno = 755 (0x2f3), region = 40  ;;  %922 = vmatprep.subr.bf16.mxu0 (!%p191_p9), %v1050_v0  ;;  %664 = vmatprep.mubr.f32.mxu1 (!%p191_p9), %v1132_v18  ;;  %v1264_v19 = vld [vmem:[%s1388_s2] ss:$0 sm:$0xff] (!%p191_p9)  ;;  %s215_s8 = sand.u32 (!%p191_p9), 1, %s1122_s19   ;;  %vm748_vm2 = vcmask (!%p191_p9), 73728  }
   0xf   : > { %923 = vmatpush3.bf16.msra.mxu0 (!%p191_p9), %v1050_v0  ;;  %s860_s11 = sshll.u32 (!%p191_p9), %s1188_s22, 4  ;;  %s216_s12 = scalar_lea.vmem (!%p191_p9), [#allocation2], %s215_s8 }
  0x10   : > { %924 = vmatprep.subr.bf16.mxu0 (!%p191_p9), %v1051_v1  ;;  %s1344_s16 = scalar_lea.hbm (!%p191_p9), %s1391_s5, %s860_s11  ;;  %s751_s17 = scalar_lea.sflag (!%p191_p9), [#allocation3], %s215_s8 }
  0x13   : > { %925 = vmatpush3.bf16.msra.mxu0 (!%p191_p9), %v1051_v1 }
  0x15   : > { %s218_s9 = scalar_select %p217_p10, %s1188_s22, 1 }
  0x16   : > { %s1136_s22 = smov [#allocation2]  }
  0x17   : > { %s863_s10 = sshll.u32 %s218_s9, 7  ;;  %s1072_s25 = sshll.u32 %s1136_s22, 4  ;;  %s1073_s25 = int_to_ptr.vmem [resolvable:$false] %s1072_s25 }
  0x18   : > { %s1226_s13 = scalar_lea.vmem %s1386_s0, %s863_s10  ;;  %s1074_s26 = scalar_lea.vmem %s1073_s25, 32 }
  0x19   : > { %v1052_v2 = vld [vmem:[%s1226_s13] sm:$0xff]   ;;  %v1053_v3 = vld [vmem:[%s1226_s13 + $0x8] sm:$0xff]   ;;  %v1054_v4 = vld [vmem:[%s1226_s13 + $0x10] sm:$0xff]  }
  0x1a   : > { %926 = vmatprep.mubr.msk.bf16.mxu0 %vm358_vm0, %v1052_v2  ;;  %v1055_v5 = vld [vmem:[%s1226_s13 + $0x18] sm:$0xff]   ;;  %v1056_v6 = vld [vmem:[%s1226_s13 + $0x20] sm:$0xff]   ;;  %v1057_v7 = vld [vmem:[%s1226_s13 + $0x28] sm:$0xff]  }
  0x1b   : > { %927 = vmatmul.mubr.msk.bf16.vlgmr.msra.gmra.mrb[0].mxu0 %vm358_vm0, %v1053_v3  ;;  %v1058_v8 = vld [vmem:[%s1226_s13 + $0x30] sm:$0xff]   ;;  %v1059_v9 = vld [vmem:[%s1226_s13 + $0x38] sm:$0xff]   ;;  %v1060_v10 = vld [vmem:[%s1226_s13 + $0x40] sm:$0xff]  }
  0x1c   : > { %930 = vmatprep.mubr.msk.bf16.mxu0 %vm358_vm0, %v1054_v4  ;;  %v1061_v11 = vld [vmem:[%s1226_s13 + $0x48] sm:$0xff]   ;;  %v1062_v12 = vld [vmem:[%s1226_s13 + $0x50] sm:$0xff]   ;;  %v1063_v13 = vld [vmem:[%s1226_s13 + $0x58] sm:$0xff]  }
  0x1d   : > { %v1064_v14 = vld [vmem:[%s1226_s13 + $0x60] sm:$0xff]   ;;  %v1065_v15 = vld [vmem:[%s1226_s13 + $0x68] sm:$0xff]   ;;  %v1066_v16 = vld [vmem:[%s1226_s13 + $0x70] sm:$0xff]  }
  0x1e   : > { %v1067_v17 = vld [vmem:[%s1226_s13 + $0x78] sm:$0xff]   ;;  %s763_s13 = sshll.u32 %s216_s12, 4  ;;  %s1346_s13 = int_to_ptr.vmem [resolvable:$true] %s763_s13 }
  0x1f   : > { %s1068_s23 = scalar_lea.vmem %s1346_s13, 16  ;;  %p1075_p0 = scmp.lt.s32.totalorder %s1346_s13, %s1073_s25 }
  0x20   : > { %p1069_p11 = scmp.ne.s32.totalorder %s1346_s13, %s1068_s23  ;;  %p1076_p1 = scmp.lt.s32.totalorder %s1074_s26, %s1068_s23 }
  0x22   : > { %p1070_p12 = pnand %p1069_p11, %p1205_p5  ;;  %p1077_p2 = por %p1076_p1, %p1075_p0 }
  0x23   : > { %931 = vmatmul.mubr.msk.bf16.gmra.mrb[4].mxu0 %vm358_vm0, %v1055_v5 }
  0x24   : > { %934 = vmatprep.mubr.msk.bf16.mxu0 %vm358_vm0, %v1056_v6  ;;  %p1071_p13 = pneg %p1070_p12 }
  0x26   : > { %p1078_p3 = pnand %p1077_p2, %p1071_p13 }
  0x2b   : > { %935 = vmatmul.mubr.msk.bf16.gmra.mrb[8].mxu0 %vm358_vm0, %v1057_v7 }
  0x2c   : > { %938 = vmatprep.mubr.msk.bf16.mxu0 %vm358_vm0, %v1058_v8 }
  0x33   : > { %939 = vmatmul.mubr.msk.bf16.gmra.mrb[12].mxu0 %vm358_vm0, %v1059_v9 }
  0x34   : > { %942 = vmatprep.mubr.msk.bf16.mxu0 %vm358_vm0, %v1060_v10 }
  0x3b   : > { %943 = vmatmul.mubr.msk.bf16.gmra.mrb[16].mxu0 %vm358_vm0, %v1061_v11 }
  0x3c   : > { %946 = vmatprep.mubr.msk.bf16.mxu0 %vm358_vm0, %v1062_v12 }
  0x43   : > { %947 = vmatmul.mubr.msk.bf16.gmra.mrb[20].mxu0 %vm358_vm0, %v1063_v13 }
  0x44   : > { %950 = vmatprep.mubr.msk.bf16.mxu0 %vm358_vm0, %v1064_v14 }
  0x4b   : > { %951 = vmatmul.mubr.msk.bf16.gmra.mrb[24].mxu0 %vm358_vm0, %v1065_v15 }
  0x4c   : > { %954 = vmatprep.mubr.msk.bf16.mxu0 %vm358_vm0, %v1066_v16 }
  0x53   : > { %955 = vmatmul.mubr.msk.bf16.gmra.mrb[28].mxu0 %vm358_vm0, %v1067_v17 }
  0xee   : > { %v928_v20 = vpop.f32.mrb[0].mxu0 }
  0xef   : > { %v450_v21 = vadd.f32 %v928_v20, %v1264_v19  ;;  %v441_v22 = vpop.f32.mrb[1].mxu0 }
  0xf0   : > { %v442_v23 = vadd.f32 %v1264_v19, %v441_v22  ;;  %v929_v24 = vpop.f32.mrb[2].mxu0 }
  0xf1   : > { %v453_v25 = vadd.f32 %v929_v24, %v1264_v19  ;;  %v444_v26 = vpop.f32.mrb[3].mxu0  ;;  %v570_v28 = vmax.f32 %v450_v21, 0.0 }
  0xf2   : > { %v445_v27 = vadd.f32 %v1264_v19, %v444_v26  ;;  %v568_v30 = vmax.f32 %v442_v23, 0.0 }
  0xf3   : > { %v571_v29 = vmax.f32 %v453_v25, 0.0 }
  0xf4   : > { %v569_v31 = vmax.f32 %v445_v27, 0.0 }
  0xf5   : > { %v1270_v32 = vpack.c.bf16 %v571_v29, %v570_v28 }
  0xf6   : > { %v932_v33 = vpop.f32.mrb[4].mxu0  ;;  %v1272_v34 = vpack.c.bf16 %v569_v31, %v568_v30 }
  0xf7   : > { %v466_v35 = vadd.f32 %v932_v33, %v1264_v19  ;;  %v457_v36 = vpop.f32.mrb[5].mxu0 }
  0xf8   : > { %v458_v37 = vadd.f32 %v1264_v19, %v457_v36  ;;  %v933_v38 = vpop.f32.mrb[6].mxu0 }
  0xf9   : > { %v469_v39 = vadd.f32 %v933_v38, %v1264_v19  ;;  %v460_v40 = vpop.f32.mrb[7].mxu0  ;;  %v574_v42 = vmax.f32 %v466_v35, 0.0 }
  0xfa   : > { %v461_v41 = vadd.f32 %v1264_v19, %v460_v40  ;;  %v572_v44 = vmax.f32 %v458_v37, 0.0 }
  0xfb   : > { %v575_v43 = vmax.f32 %v469_v39, 0.0 }
  0xfc   : > { %v573_v45 = vmax.f32 %v461_v41, 0.0 }
  0xfd   : > { %v1278_v46 = vpack.c.bf16 %v575_v43, %v574_v42 }
  0xfe   : > { %v1280_v47 = vpack.c.bf16 %v573_v45, %v572_v44  ;;  %v936_v48 = vpop.f32.mrb[8].mxu0 }
  0xff   : > { %v482_v49 = vadd.f32 %v936_v48, %v1264_v19  ;;  %v473_v50 = vpop.f32.mrb[9].mxu0 }
 0x100   : > { %v474_v51 = vadd.f32 %v1264_v19, %v473_v50  ;;  %v937_v52 = vpop.f32.mrb[10].mxu0 }
 0x101   : > { %v485_v53 = vadd.f32 %v937_v52, %v1264_v19  ;;  %v476_v54 = vpop.f32.mrb[11].mxu0  ;;  %v578_v56 = vmax.f32 %v482_v49, 0.0 }
 0x102   : > { %v477_v55 = vadd.f32 %v1264_v19, %v476_v54  ;;  %v576_v58 = vmax.f32 %v474_v51, 0.0 }
 0x103   : > { %v579_v57 = vmax.f32 %v485_v53, 0.0 }
 0x104   : > { %v577_v59 = vmax.f32 %v477_v55, 0.0 }
 0x105   : > { %v1286_v60 = vpack.c.bf16 %v579_v57, %v578_v56 }
 0x106   : > { %v1288_v61 = vpack.c.bf16 %v577_v59, %v576_v58  ;;  %v940_v62 = vpop.f32.mrb[12].mxu0 }
 0x107   : > { %v498_v63 = vadd.f32 %v940_v62, %v1264_v19  ;;  %v489_v0 = vpop.f32.mrb[13].mxu0 }
 0x108   : > { %v490_v1 = vadd.f32 %v1264_v19, %v489_v0  ;;  %v941_v2 = vpop.f32.mrb[14].mxu0 }
 0x109   : > { %v501_v3 = vadd.f32 %v941_v2, %v1264_v19  ;;  %v492_v4 = vpop.f32.mrb[15].mxu0  ;;  %v582_v6 = vmax.f32 %v498_v63, 0.0 }
 0x10a   : > { %v493_v5 = vadd.f32 %v1264_v19, %v492_v4  ;;  %v580_v8 = vmax.f32 %v490_v1, 0.0 }
 0x10b   : > { %v583_v7 = vmax.f32 %v501_v3, 0.0 }
 0x10c   : > { %v581_v9 = vmax.f32 %v493_v5, 0.0 }
 0x10d   : > { %v1294_v10 = vpack.c.bf16 %v583_v7, %v582_v6 }
 0x10e   : > { %v1296_v11 = vpack.c.bf16 %v581_v9, %v580_v8  ;;  %v944_v12 = vpop.f32.mrb[16].mxu0  ;;  %v670_v8 = vld [vmem:[%s1389_s3] sm:$0xff]  ;;  %v1133_v9 = vmov 0.0|0.0  }
 0x10f   : > { %v514_v13 = vadd.f32 %v944_v12, %v1264_v19  ;;  %v505_v14 = vpop.f32.mrb[17].mxu0 }
 0x110   : > { %v506_v15 = vadd.f32 %v1264_v19, %v505_v14  ;;  %v945_v16 = vpop.f32.mrb[18].mxu0 }
 0x111   : > { %v517_v17 = vadd.f32 %v945_v16, %v1264_v19  ;;  %v508_v20 = vpop.f32.mrb[19].mxu0  ;;  %v586_v22 = vmax.f32 %v514_v13, 0.0 }
 0x112   : > { %v509_v21 = vadd.f32 %v1264_v19, %v508_v20  ;;  %v584_v24 = vmax.f32 %v506_v15, 0.0 }
 0x113   : > { %v587_v23 = vmax.f32 %v517_v17, 0.0 }
 0x114   : > { %v585_v25 = vmax.f32 %v509_v21, 0.0 }
 0x115   : > { %v973_v26 = vpack.c.bf16 %v587_v23, %v586_v22 }
 0x116   : > { %v948_v27 = vpop.f32.mrb[20].mxu0  ;;  %v969_v28 = vpack.c.bf16 %v585_v25, %v584_v24 }
 0x117   : > { %v530_v29 = vadd.f32 %v948_v27, %v1264_v19  ;;  %v521_v30 = vpop.f32.mrb[21].mxu0 }
 0x118   : > { %v522_v31 = vadd.f32 %v1264_v19, %v521_v30  ;;  %v949_v33 = vpop.f32.mrb[22].mxu0  ;;  %970 = vmatprep.subr.bf16.mxu1 %v969_v28 }
 0x119   : > { %v533_v35 = vadd.f32 %v949_v33, %v1264_v19  ;;  %v524_v36 = vpop.f32.mrb[23].mxu0  ;;  %972 = vmatpush3.bf16.msra.mxu1 %v1272_v34  ;;  %v590_v38 = vmax.f32 %v530_v29, 0.0 }
 0x11a   : > { %v525_v37 = vadd.f32 %v1264_v19, %v524_v36  ;;  %974 = vmatprep.subr.bf16.mxu1 %v973_v26  ;;  %v588_v40 = vmax.f32 %v522_v31, 0.0 }
 0x11b   : > { %v591_v39 = vmax.f32 %v533_v35, 0.0 }
 0x11c   : > { %v589_v41 = vmax.f32 %v525_v37, 0.0 }
 0x11d   : > { %v981_v42 = vpack.c.bf16 %v591_v39, %v590_v38  ;;  %976 = vmatpush3.bf16.msra.mxu1 %v1270_v32 }
 0x11e   : > { %v977_v43 = vpack.c.bf16 %v589_v41, %v588_v40  ;;  %v952_v44 = vpop.f32.mrb[24].mxu0 }
 0x11f   : > { %v546_v45 = vadd.f32 %v952_v44, %v1264_v19  ;;  %v537_v48 = vpop.f32.mrb[25].mxu0 }
 0x120   : > { %v538_v49 = vadd.f32 %v1264_v19, %v537_v48  ;;  %v953_v50 = vpop.f32.mrb[26].mxu0  ;;  %978 = vmatprep.subr.bf16.mxu1 %v977_v43 }
 0x121   : > { %v549_v34 = vadd.f32 %v953_v50, %v1264_v19  ;;  %v540_v51 = vpop.f32.mrb[27].mxu0  ;;  %980 = vmatpush3.bf16.msra.mxu1 %v1280_v47  ;;  %v594_v53 = vmax.f32 %v546_v45, 0.0 }
 0x122   : > { %v541_v52 = vadd.f32 %v1264_v19, %v540_v51  ;;  %982 = vmatprep.subr.bf16.mxu1 %v981_v42  ;;  %v592_v32 = vmax.f32 %v538_v49, 0.0 }
 0x123   : > { %v595_v54 = vmax.f32 %v549_v34, 0.0 }
 0x124   : > { %v593_v55 = vmax.f32 %v541_v52, 0.0 }
 0x125   : > { %v989_v56 = vpack.c.bf16 %v595_v54, %v594_v53  ;;  %984 = vmatpush3.bf16.msra.mxu1 %v1278_v46 }
 0x126   : > { %v985_v57 = vpack.c.bf16 %v593_v55, %v592_v32  ;;  %v956_v58 = vpop.f32.mrb[28].mxu0 }
 0x127   : > { %v562_v59 = vadd.f32 %v956_v58, %v1264_v19  ;;  %v553_v62 = vpop.f32.mrb[29].mxu0 }
 0x128   : > { %v554_v63 = vadd.f32 %v1264_v19, %v553_v62  ;;  %v957_v0 = vpop.f32.mrb[30].mxu0  ;;  %986 = vmatprep.subr.bf16.mxu1 %v985_v57 }
 0x129   : > { %v565_v47 = vadd.f32 %v957_v0, %v1264_v19  ;;  %v556_v1 = vpop.f32.mrb[31].mxu0  ;;  %988 = vmatpush3.bf16.msra.mxu1 %v1288_v61  ;;  %v598_v3 = vmax.f32 %v562_v59, 0.0 }
 0x12a   : > { %v557_v2 = vadd.f32 %v1264_v19, %v556_v1  ;;  %990 = vmatprep.subr.bf16.mxu1 %v989_v56  ;;  %v596_v46 = vmax.f32 %v554_v63, 0.0  ;;  %v671_v19 = vld [vmem:[%s1389_s3 + $0x8] sm:$0xff] }
 0x12b   : > { %v599_v4 = vmax.f32 %v565_v47, 0.0  ;;  %v1002_v61 = vpack.c.bf16 %v671_v19, %v670_v8 }
 0x12c   : > { %v597_v5 = vmax.f32 %v557_v2, 0.0 }
 0x12d   : > { %v997_v6 = vpack.c.bf16 %v599_v4, %v598_v3  ;;  %992 = vmatpush3.bf16.msra.mxu1 %v1286_v60  ;;  %v672_v60 = vld [vmem:[%s1389_s3 + $0x10] sm:$0xff] }
 0x12e   : > { %v993_v7 = vpack.c.bf16 %v597_v5, %v596_v46 }
 0x130   : > { %994 = vmatprep.subr.bf16.mxu1 %v993_v7 }
 0x131   : > { %996 = vmatpush3.bf16.msra.mxu1 %v1296_v11  ;;  %v673_v11 = vld [vmem:[%s1389_s3 + $0x18] sm:$0xff] }
 0x132   : > { %998 = vmatprep.subr.bf16.mxu1 %v997_v6  ;;  %v1005_v12 = vpack.c.bf16 %v673_v11, %v672_v60 }
 0x135   : > { %1000 = vmatpush3.bf16.msra.mxu1 %v1294_v10  ;;  %v1135_v10 = vmov 0.0  }
 0x136   : > { %1001 = vmatprep.subr.bf16.mxu1 %v1133_v9 }
 0x138   : > { %665 = vmatmul.mubr.f32.vlgmr.msra.gmra.mrb[0].mxu1 %v1132_v18  ;;  %v674_v18 = vld [vmem:[%s1390_s4] sm:$0x1] }
 0x139   : > { %1003 = vmatpush3.bf16.msra.mxu1 %v1002_v61  ;;  %966 = vmatprep.mubr.msk.f32.mxu1 %vm1134_vm1, %v1135_v10 }
 0x13a   : > { %1004 = vmatprep.subr.bf16.mxu1 %v1133_v9 }
 0x13d   : > { %1006 = vmatpush3.bf16.msra.mxu1 %v1005_v12 }
 0x20b   : > { %v914_v13 = vpop.f32.mrb[0].mxu1 }
 0x20c   : > { %v915_v14 = vpop.f32.mrb[1].mxu1 }
 0x20d   : > { %v916_v15 = vadd.f32 %v915_v14, %v914_v13 }
 0x20f   : > { %967 = vmatmul.mubr.msk.f32.vlgmr.msra.gmra.mrb[2].mxu1 %vm358_vm0, %v916_v15 }
 0x2e2   : > { %v744_v16 = vpop.f32.mrb[2].mxu1 }
 0x2e3   : > { %v745_v17 = vadd.f32 %v744_v16, %v674_v18  ;;  %v968_v20 = vpop.f32.mrb[3].mxu1 }
 0x2e5   : > { %749 = vst.msk [vmem:[%s216_s12] sm:$0x1] %vm748_vm2, %v745_v17 }
 0x2e6   : > { %1081 = shalt.err (!%p1078_p3)
}
 0x2e7   : > { %s1082_s30 = scalar_lea.hbm %s1344_s16, 16  ;;  %s1086_s8 = scalar_lea.hbm %s1391_s5, 32 }
 0x2e8   : > { %p1083_p4 = scmp.ne.s32.totalorder %s1344_s16, %s1082_s30  ;;  %p1087_p9 = scmp.lt.u32.totalorder %s1344_s16, %s1391_s5 }
 0x2e9   : > { %p1088_p10 = scmp.lt.u32.totalorder %s1086_s8, %s1082_s30  ;;  %p1090_p12 = scmp.lt.u32.totalorder %s1082_s30, %s1344_s16 }
 0x2ea   : > { %p1084_p7 = pnand %p1083_p4, %p1205_p5 }
 0x2eb   : > { %p1089_p11 = por %p1088_p10, %p1087_p9 }
 0x2ec   : > { %p1085_p8 = pneg %p1084_p7 }
 0x2ed   : > { %p1091_p13 = por %p1090_p12, %p1089_p11 }
 0x2ef   : > { %p1092_p0 = pnand %p1091_p13, %p1085_p8 }
 0x2f1   : > { %1095 = shalt.err (!%p1092_p0)
}
 0x2f2   : > { %1007 = dma.vmem_to_hbm [thread:$0]  (%p1205_p5), %s1346_s13, 16, %s1344_s16, %s751_s17  }
 0x2f3 PF: > { %p1013_p1 = scmp.ge.s32.totalorder %s1130_s21, 2  ;;  %s775_s11 = sand.u32 1, %s1118_s18  }
 0x2f4   : > { %s776_s12 = scalar_lea.sflag [#allocation3], %s775_s11 }
 0x2f5   : > { %p1010_p2 = pnand %p1013_p1, %p1209_p6 }
 0x2f7   : > { %1113 = dma.done.wait (!%p1010_p2), %s776_s12, 16  }
 0x2f8   : > { %1115 = vsyncadd (!%p1010_p2), %s776_s12, 4294967280  ;;  %p15_p3 = scmp.ge.s32.totalorder %s1192_s24, 4   ;;  %s1394_s18 = smov %s1122_s19 }
 0x2f9   : > { %s1395_s19 = smov %s1126_s20  ;;  %s1396_s20 = smov %s1203_s27 }
 0x2fa   : > { %s1397_s21 = smov %s1192_s24  ;;  %17 = sbr.rel (!%p15_p3) target bundleno = 3 (0x3), region = 75 }
 0x301   :  { %780 = vsyncpa [#allocation3], 1 }
 0x302   :  { %782 = vsyncpa [#allocation3 + $0x1], 1 }

</bundles_post_ra>
